<compile_context>
chip_gen: v5e
topology: v5e:2x2
jax: 0.10.0
libtpu: 0.0.40
codegen_flags: <defaults>
</compile_context>

<pallas_src>
import functools

import jax
import jax.numpy as jnp
from jax.experimental import pallas as pl
from jax.experimental.pallas import tpu as pltpu

_LANE = 128
_SUBLANE = 8
_MAX_TB = 8192          # global batch-tile ceiling (review: 2048-8192 band)
_SPLIT_MIN_ROWS = 512   # per-core rows worth a grid split (tile>=512 ~85% roofline)


def _round_up(x, m):
    return ((x + m - 1) // m) * m


@functools.lru_cache(maxsize=None)
def _vmem_physical_bytes():
    """Physical per-core VMEM; conservative 64 MiB (v7x) fallback."""
    try:
        return int(pltpu.get_tpu_info().vmem_capacity_bytes)
    except Exception:
        return 64 << 20


# ----------------------------------------------------------------------------
# Kernel
# ----------------------------------------------------------------------------

def _mlp_kernel(x_ref, w1_ref, b1_ref, w2_ref, b2_ref, w3_ref, b3_ref, out_ref):
    """One (TB, TN) tile of the 3-layer MLP: three MXU matmuls + VPU ReLUs.

    Dots accumulate in f32; the ReLU runs in f32 and the result is cast
    straight to the next weight dtype (no-op for f32, halves h1/h2 spill
    traffic for bf16). Used for both variants: reduce=True passes the
    mean-folded (H, A) W3; reduce=False the full (H, A*Q) W3.
    """
    x = x_ref[...].astype(w1_ref.dtype)
    h1 = jnp.maximum(
        jnp.dot(x, w1_ref[...], preferred_element_type=jnp.float32) + b1_ref[...],
        0.0).astype(w2_ref.dtype)
    h2 = jnp.maximum(
        jnp.dot(h1, w2_ref[...], preferred_element_type=jnp.float32) + b2_ref[...],
        0.0).astype(w3_ref.dtype)
    out_ref[...] = (
        jnp.dot(h2, w3_ref[...], preferred_element_type=jnp.float32) + b3_ref[...]
    ).astype(out_ref.dtype)


@functools.lru_cache(maxsize=None)
def _build_mlp_call(Bp, S, H, N, TB, TN, x_bytes, w_bytes):
    """Cached pallas_call for a (Bp,S)->(Bp,N) 3-layer MLP, tiled (TB, TN)."""
    nb = Bp // TB
    nn = N // TN
    const = lambda i, j: (0, 0)

    flops = 2 * Bp * (S * H + H * H + H * N)
    bytes_accessed = (Bp * (S * x_bytes + N * 4)
                      + (S * H + H * H + H * N) * w_bytes + (2 * H + N) * 4)

    # Conservative per-grid-step VMEM footprint: double-buffered state/out
    # blocks, f32 h1/h2 temps, double-buffered weights/biases.
    step_bytes = (2 * TB * S * x_bytes + 2 * TB * TN * 4 + 2 * TB * H * 4
                  + 2 * ((S * H + H * H + H * TN) * w_bytes + (2 * H + TN) * 4))
    phys = _vmem_physical_bytes()
    vmem_limit = int(min(phys * 3 // 4, max(step_bytes * 5 // 4, 32 << 20)))

    return pl.pallas_call(
        _mlp_kernel,
        out_shape=jax.ShapeDtypeStruct((Bp, N), jnp.float32),
        grid_spec=pltpu.PrefetchScalarGridSpec(
            num_scalar_prefetch=0,
            grid=(nb, nn),
            in_specs=[
                pl.BlockSpec((TB, S), lambda i, j: (i, 0)),   # state tile
                pl.BlockSpec((S, H), const),                  # w1
                pl.BlockSpec((1, H), const),                  # b1
                pl.BlockSpec((H, H), const),                  # w2
                pl.BlockSpec((1, H), const),                  # b2
                pl.BlockSpec((H, TN), lambda i, j: (0, j)),   # w3 (folded or full)
                pl.BlockSpec((1, TN), lambda i, j: (0, j)),   # b3
            ],
            out_specs=pl.BlockSpec((TB, TN), lambda i, j: (i, j)),
        ),
        compiler_params=pltpu.CompilerParams(
            dimension_semantics=("parallel", "parallel"),
            vmem_limit_bytes=vmem_limit),
        cost_estimate=pl.CostEstimate(
            flops=int(flops), transcendentals=0,
            bytes_accessed=int(bytes_accessed)),
    )


# ----------------------------------------------------------------------------
# Tile selection
# ----------------------------------------------------------------------------

def _pick_n_tile(N, cap=1024):
    """Output-width tile: full N when small, else a 128-multiple divisor."""
    if N <= cap:
        return N
    tn = cap - (cap % _LANE)
    while tn >= _LANE:
        if N % tn == 0:
            return tn
        tn -= _LANE
    return N  # no clean divisor: keep full width


def _pick_batch_tile(B, S, TN, H, x_bytes, w_bytes):
    """VMEM-budget-derived batch tile (rows, multiple of 8 when tiling)."""
    budget = _vmem_physical_bytes() // 2        # leave half of VMEM as headroom
    fixed = 2 * ((S * H + H * H + H * TN) * w_bytes + (2 * H + TN) * 4)
    per_row = 2 * S * x_bytes + 2 * TN * 4 + 2 * H * 4   # io double-buf + f32 temps
    cap = max(_SUBLANE, (budget - fixed) // per_row)
    cap = min(cap, _MAX_TB)
    cap -= cap % _SUBLANE
    cap = max(cap, _SUBLANE)

    if B <= cap:
        # v7x megacore: give the "parallel" batch axis >=2 steps once there is
        # enough work per core to amortise the ~0.35 us per-step overhead.
        if B >= 2 * _SPLIT_MIN_ROWS:
            return min(cap, _round_up(-(-B // 2), _SUBLANE))
        return B
    # B > cap: prefer a divisor of B in [cap/2, cap] (no batch padding).
    tb = cap
    while tb >= max(_SUBLANE, cap // 2):
        if B % tb == 0:
            return tb
        tb -= _SUBLANE
    return cap  # fall back to padding B up to a multiple of cap


# ----------------------------------------------------------------------------
# Parameter preparation + forward wrapper
# ----------------------------------------------------------------------------

def prepare_params(params, action_dim, quantiles, *, use_bf16=False):
    """Hoisted, kernel-ready parameter sets (built once alongside the params).

    'reduced': quantile mean folded into layer 3 (W3 @ avg -> (H, A)).
    'full'   : original third layer (for reduce=False).
    """
    w1, b1, w2, b2, w3, b3 = params
    S, H = w1.shape
    AQ = action_dim * quantiles
    assert w3.shape == (H, AQ) and b3.shape == (AQ,)

    w_dt = jnp.bfloat16 if use_bf16 else jnp.float32
    b1r = b1.reshape(1, H).astype(jnp.float32)
    b2r = b2.reshape(1, H).astype(jnp.float32)

    # Fold the quantile mean (a linear map) into layer 3, in f32.
    # avg[a*Q + j, a] = 1/Q matches the .view(-1, A, Q) flattening.
    avg = (jnp.repeat(jnp.eye(action_dim, dtype=jnp.float32), quantiles, axis=0)
           / float(quantiles))                                        # (AQ, A)
    w3_eff = w3.astype(jnp.float32) @ avg                             # (H, A)
    b3_eff = (b3.astype(jnp.float32).reshape(action_dim, quantiles)
              .mean(-1).reshape(1, action_dim))

    common = (w1.astype(w_dt), b1r, w2.astype(w_dt), b2r)
    return {
        "reduced": common + (w3_eff.astype(w_dt), b3_eff),
        "full": common + (w3.astype(w_dt), b3.reshape(1, AQ).astype(jnp.float32)),
        "action_dim": action_dim, "quantiles": quantiles,
        "hidden": H, "state_dim": S,
        "w_bytes": 2 if use_bf16 else 4,
    }


def quantile_regression_q(state, prepared, *, reduce=True, batch_tile=None):
    """state: (B, state_dim). Returns (B, A) if reduce else (B, A, Q).

    Pass bf16 state directly if the producer has it — the kernel casts per
    tile, so no standalone wrapper cast (and half the input DMA).
    """
    B, S = state.shape
    A = prepared["action_dim"]
    Q = prepared["quantiles"]
    H = prepared["hidden"]
    assert S == prepared["state_dim"], (S, prepared["state_dim"])
    w_bytes = prepared["w_bytes"]
    x_bytes = jnp.dtype(state.dtype).itemsize

    if reduce:
        w1, b1, w2, b2, w3, b3 = prepared["reduced"]
        N = A
    else:
        w1, b1, w2, b2, w3, b3 = prepared["full"]
        N = A * Q

    TN = _pick_n_tile(N)
    TB = (batch_tile if batch_tile is not None
          else _pick_batch_tile(B, S, TN, H, x_bytes, w_bytes))
    if B > TB:
        assert TB % _SUBLANE == 0, TB

    nb = -(-B // TB)
    Bp = nb * TB
    x = state if Bp == B else jnp.pad(state, ((0, Bp - B), (0, 0)))

    call = _build_mlp_call(Bp, S, H, N, TB, TN, x_bytes, w_bytes)
    out = call(x, w1, b1, w2, b2, w3, b3)
    if Bp != B:
        out = out[:B]
    return out if reduce else out.reshape(B, A, Q)


# ----------------------------------------------------------------------------
# init / reference / test
# ----------------------------------------------------------------------------

def init_params(key, state_dim, action_dim, quantiles, hidden=128):
    """Deterministic init mirroring nn.Linear default (U(+/- 1/sqrt(fan_in)))."""
    ks = jax.random.split(key, 6)

    def lin(kw, kb, fan_in, fan_out):
        bound = 1.0 / jnp.sqrt(fan_in)
        w = jax.random.uniform(kw, (fan_in, fan_out), jnp.float32, -bound, bound)
        b = jax.random.uniform(kb, (fan_out,), jnp.float32, -bound, bound)
        return w, b

    w1, b1 = lin(ks[0], ks[1], state_dim, hidden)
    w2, b2 = lin(ks[2], ks[3], hidden, hidden)
    w3, b3 = lin(ks[4], ks[5], hidden, action_dim * quantiles)
    return (w1, b1, w2, b2, w3, b3)


def reference(state, params, action_dim, quantiles, reduce=True):
    w1, b1, w2, b2, w3, b3 = params
    h = jnp.maximum(state @ w1 + b1, 0.0)
    h = jnp.maximum(h @ w2 + b2, 0.0)
    q = (h @ w3 + b3).reshape(-1, action_dim, quantiles)
    return q.mean(axis=-1) if reduce else q


if __name__ == "__main__":
    B, S, A, Q = 8, 32, 4, 32
    key = jax.random.PRNGKey(0)
    kx, kp = jax.random.split(key)
    state = jax.random.normal(kx, (B, S), dtype=jnp.float32)
    params = init_params(kp, S, A, Q)
    prepared = prepare_params(params, action_dim=A, quantiles=Q)

    # reduce=True path (mean folded into W3, direct (B, A) output).
    out = quantile_regression_q(state, prepared, reduce=True)
    out = jax.block_until_ready(out)
    ref = reference(state, params, A, Q, reduce=True)
    assert out.shape == (B, A), out.shape
    assert jnp.allclose(out, ref, atol=1e-4, rtol=1e-4), \
        float(jnp.max(jnp.abs(out - ref)))

    # reduce=False path (full (B, A, Q) quantile tensor).
    out_full = quantile_regression_q(state, prepared, reduce=False)
    out_full = jax.block_until_ready(out_full)
    ref_full = reference(state, params, A, Q, reduce=False)
    assert out_full.shape == (B, A, Q)
    assert jnp.allclose(out_full, ref_full, atol=1e-4, rtol=1e-4), \
        float(jnp.max(jnp.abs(out_full - ref_full)))

    # bf16-operand variant (f32 accumulation, bf16 h1/h2) — looser tolerance.
    prepared_bf16 = prepare_params(params, action_dim=A, quantiles=Q,
                                   use_bf16=True)
    out_bf16 = quantile_regression_q(state, prepared_bf16, reduce=True)
    out_bf16 = jax.block_until_ready(out_bf16)
    assert out_bf16.shape == (B, A)
    assert jnp.allclose(out_bf16, ref, atol=5e-2, rtol=5e-2), \
        float(jnp.max(jnp.abs(out_bf16 - ref)))

    print("KERNEL_OK")
</pallas_src>

<mosaic_0001>
module attributes {stable_mosaic.version = 11 : i64} {
  func.func @_mlp_kernel(%arg0: i32, %arg1: i32, %arg2: memref<8x32xf32, #tpu.memory_space<vmem>>, %arg3: memref<32x128xf32, #tpu.memory_space<vmem>>, %arg4: memref<1x128xf32, #tpu.memory_space<vmem>>, %arg5: memref<128x128xf32, #tpu.memory_space<vmem>>, %arg6: memref<1x128xf32, #tpu.memory_space<vmem>>, %arg7: memref<128x4xf32, #tpu.memory_space<vmem>>, %arg8: memref<1x4xf32, #tpu.memory_space<vmem>>, %arg9: memref<8x4xf32, #tpu.memory_space<vmem>>) attributes {dimension_semantics = [#tpu.dimension_semantics<parallel>, #tpu.dimension_semantics<parallel>], iteration_bounds = array<i64: 1, 1>, scalar_prefetch = 0 : i64, scratch_operands = 0 : i64, tpu.core_type = #tpu.core_type<tc>, window_params = [{transform_indices = @transform_0, window_bounds = array<i64: 8, 32>}, {pipeline_mode = #tpu.pipeline_mode<synchronous>, transform_indices = @transform_1, window_bounds = array<i64: 32, 128>}, {pipeline_mode = #tpu.pipeline_mode<synchronous>, transform_indices = @transform_2, window_bounds = array<i64: 1, 128>}, {pipeline_mode = #tpu.pipeline_mode<synchronous>, transform_indices = @transform_3, window_bounds = array<i64: 128, 128>}, {pipeline_mode = #tpu.pipeline_mode<synchronous>, transform_indices = @transform_4, window_bounds = array<i64: 1, 128>}, {transform_indices = @transform_5, window_bounds = array<i64: 128, 4>}, {transform_indices = @transform_6, window_bounds = array<i64: 1, 4>}, {transform_indices = @transform_7, window_bounds = array<i64: 8, 4>}]} {
    %c0 = arith.constant 0 : index
    %c0_0 = arith.constant 0 : index
    %0 = vector.load %arg2[%c0, %c0_0] : memref<8x32xf32, #tpu.memory_space<vmem>>, vector<8x32xf32>
    %c0_1 = arith.constant 0 : index
    %c0_2 = arith.constant 0 : index
    %1 = vector.load %arg3[%c0_1, %c0_2] : memref<32x128xf32, #tpu.memory_space<vmem>>, vector<32x128xf32>
    %cst = arith.constant dense<0.000000e+00> : vector<8x128xf32>
    %2 = tpu.matmul %0, %1, %cst {dimension_numbers = #tpu.dot_dimension_numbers<[1], [0], [0], [1], [0, 0, 1, 1], [], []>} : vector<8x32xf32>, vector<32x128xf32>, vector<8x128xf32> -> vector<8x128xf32>
    %c0_3 = arith.constant 0 : index
    %c0_4 = arith.constant 0 : index
    %3 = vector.load %arg4[%c0_3, %c0_4] : memref<1x128xf32, #tpu.memory_space<vmem>>, vector<1x128xf32>
    %4 = vector.broadcast %3 : vector<1x128xf32> to vector<8x128xf32>
    %5 = arith.addf %2, %4 : vector<8x128xf32>
    %cst_5 = arith.constant 0.000000e+00 : f32
    %6 = vector.broadcast %cst_5 : f32 to vector<8x128xf32>
    %7 = arith.maximumf %5, %6 : vector<8x128xf32>
    %c0_6 = arith.constant 0 : index
    %c0_7 = arith.constant 0 : index
    %8 = vector.load %arg5[%c0_6, %c0_7] : memref<128x128xf32, #tpu.memory_space<vmem>>, vector<128x128xf32>
    %cst_8 = arith.constant dense<0.000000e+00> : vector<8x128xf32>
    %9 = tpu.matmul %7, %8, %cst_8 {dimension_numbers = #tpu.dot_dimension_numbers<[1], [0], [0], [1], [0, 0, 1, 1], [], []>} : vector<8x128xf32>, vector<128x128xf32>, vector<8x128xf32> -> vector<8x128xf32>
    %c0_9 = arith.constant 0 : index
    %c0_10 = arith.constant 0 : index
    %10 = vector.load %arg6[%c0_9, %c0_10] : memref<1x128xf32, #tpu.memory_space<vmem>>, vector<1x128xf32>
    %11 = vector.broadcast %10 : vector<1x128xf32> to vector<8x128xf32>
    %12 = arith.addf %9, %11 : vector<8x128xf32>
    %cst_11 = arith.constant 0.000000e+00 : f32
    %13 = vector.broadcast %cst_11 : f32 to vector<8x128xf32>
    %14 = arith.maximumf %12, %13 : vector<8x128xf32>
    %c0_12 = arith.constant 0 : index
    %c0_13 = arith.constant 0 : index
    %15 = vector.load %arg7[%c0_12, %c0_13] : memref<128x4xf32, #tpu.memory_space<vmem>>, vector<128x4xf32>
    %cst_14 = arith.constant dense<0.000000e+00> : vector<8x4xf32>
    %16 = tpu.matmul %14, %15, %cst_14 {dimension_numbers = #tpu.dot_dimension_numbers<[1], [0], [0], [1], [0, 0, 1, 1], [], []>} : vector<8x128xf32>, vector<128x4xf32>, vector<8x4xf32> -> vector<8x4xf32>
    %c0_15 = arith.constant 0 : index
    %c0_16 = arith.constant 0 : index
    %17 = vector.load %arg8[%c0_15, %c0_16] : memref<1x4xf32, #tpu.memory_space<vmem>>, vector<1x4xf32>
    %18 = vector.broadcast %17 : vector<1x4xf32> to vector<8x4xf32>
    %19 = arith.addf %16, %18 : vector<8x4xf32>
    %c0_17 = arith.constant 0 : index
    %c0_18 = arith.constant 0 : index
    %20 = vector.load %arg9[%c0_17, %c0_18] : memref<8x4xf32, #tpu.memory_space<vmem>>, vector<8x4xf32>
    tpu.vector_store %arg9[%c0_17, %c0_18], %19 {strides = array<i32>} : memref<8x4xf32, #tpu.memory_space<vmem>>, vector<8x4xf32>,
    return
  }
  func.func @transform_0(%arg0: i32, %arg1: i32) -> (i32, i32) {
    %c0_i32 = arith.constant 0 : i32
    %c0_i32_0 = arith.constant 0 : i32
    return %arg0, %c0_i32 : i32, i32
  }
  func.func @transform_1(%arg0: i32, %arg1: i32) -> (i32, i32) {
    %c0_i32 = arith.constant 0 : i32
    %c0_i32_0 = arith.constant 0 : i32
    %c0_i32_1 = arith.constant 0 : i32
    return %c0_i32, %c0_i32_0 : i32, i32
  }
  func.func @transform_2(%arg0: i32, %arg1: i32) -> (i32, i32) {
    %c0_i32 = arith.constant 0 : i32
    %c0_i32_0 = arith.constant 0 : i32
    %c0_i32_1 = arith.constant 0 : i32
    return %c0_i32, %c0_i32_0 : i32, i32
  }
  func.func @transform_3(%arg0: i32, %arg1: i32) -> (i32, i32) {
    %c0_i32 = arith.constant 0 : i32
    %c0_i32_0 = arith.constant 0 : i32
    %c0_i32_1 = arith.constant 0 : i32
    return %c0_i32, %c0_i32_0 : i32, i32
  }
  func.func @transform_4(%arg0: i32, %arg1: i32) -> (i32, i32) {
    %c0_i32 = arith.constant 0 : i32
    %c0_i32_0 = arith.constant 0 : i32
    %c0_i32_1 = arith.constant 0 : i32
    return %c0_i32, %c0_i32_0 : i32, i32
  }
  func.func @transform_5(%arg0: i32, %arg1: i32) -> (i32, i32) {
    %c0_i32 = arith.constant 0 : i32
    %c0_i32_0 = arith.constant 0 : i32
    return %c0_i32, %arg1 : i32, i32
  }
  func.func @transform_6(%arg0: i32, %arg1: i32) -> (i32, i32) {
    %c0_i32 = arith.constant 0 : i32
    %c0_i32_0 = arith.constant 0 : i32
    return %c0_i32, %arg1 : i32, i32
  }
  func.func @transform_7(%arg0: i32, %arg1: i32) -> (i32, i32) {
    %c0_i32 = arith.constant 0 : i32
    return %arg0, %arg1 : i32, i32
  }
}

</mosaic_0001>

<bundles_post_ra>
// kernel: tpu_custom_call.1
= control target key start
LH: loop header
LB: loop body
LE: loop exit
PB: predicated region body
PF: predicated region fallthrough
CT: control target
= control target key end

     0   :  { %12 = vsyncpa [#allocation3], 0  ;;  %s397_s0 = inlined_call_operand.hbm [shape: f32[8,32], index: 0, kind: input, shape index: {}]   ;;  %s398_s1 = inlined_call_operand.hbm [shape: f32[32,128], index: 1, kind: input, shape index: {}]   ;;  %s399_s2 = inlined_call_operand.vmem [shape: f32[1,128], index: 2, kind: input, shape index: {}]   ;;  %s400_s3 = inlined_call_operand.vmem [shape: f32[128,128], index: 3, kind: input, shape index: {}]   ;;  %s401_s4 = inlined_call_operand.vmem [shape: f32[1,128], index: 4, kind: input, shape index: {}]   ;;  %s402_s5 = inlined_call_operand.vmem [shape: f32[128,4], index: 5, kind: input, shape index: {}]   ;;  %s403_s6 = inlined_call_operand.vmem [shape: f32[1,4], index: 6, kind: input, shape index: {}]   ;;  %s404_s7 = inlined_call_operand.vmem [shape: f32[8,4], index: 7, kind: output, shape index: {}]  }
   0x1   :  { %s19_s26 = sshll.u32 %s397_s0, 4  ;;  %s20_s26 = int_to_ptr.hbm [resolvable:$true] %s19_s26 }
   0x2   :  { %13 = vsyncpa [#allocation5], 0  ;;  %s239_s27 = smov [#allocation2]   ;;  %s29_s8 = sshll.u32 %s398_s1, 4  ;;  %s30_s8 = int_to_ptr.hbm [resolvable:$true] %s29_s8 }
   0x3   :  { %s21_s28 = sshll.u32 %s239_s27, 4  ;;  %s240_s9 = smov [#allocation4]   ;;  %s22_s28 = int_to_ptr.vmem [resolvable:$true] %s21_s28 }
   0x4   :  { %24 = dma.hbm_to_vmem [thread:$0]  %s20_s26, 128, %s22_s28, [#allocation3]  }
   0x5   :  { %s31_s10 = sshll.u32 %s240_s9, 4  ;;  %s241_s11 = smov 128   ;;  %s32_s10 = int_to_ptr.vmem [resolvable:$true] %s31_s10 }
   0x6   :  { %s242_s12 = smov 8  }
   0x7   :  { %37 = dma.hbm_to_vmem [thread:$0]  %s30_s8, 512, %s32_s10, [#allocation5], %s241_s11, %s241_s11, %s242_s12  }
   0x8   :  { %235 = dma.done.wait [#allocation3], 128  }
   0x9   :  { %236 = vsyncadd [#allocation3], 4294967168 }
   0xa   :  { %237 = dma.done.wait [#allocation5], 512  }
   0xb   :  { %238 = vsyncadd [#allocation5], 4294966784  ;;  %v60_v0 = vld [vmem:[#allocation4 + $0x18] sm:$0xff]  ;;  %v59_v1 = vld [vmem:[#allocation4 + $0x10] sm:$0xff]  ;;  %vm65_vm0 = vcmask 261120   ;;  %vm171_vm1 = vcmask 31744  }
   0xc   :  { %81 = vmatpush.msra.mxu0 %v60_v0  ;;  %v105_v2 = vld [vmem:[%s400_s3 + $0x78] sm:$0xff]  ;;  %v58_v3 = vld [vmem:[#allocation4 + $0x8] sm:$0xff]  ;;  %v103_v5 = vld [vmem:[%s400_s3 + $0x68] sm:$0xff] }
   0xd   :  { %110 = vmatpush.msra.mxu1 %v105_v2  ;;  %v104_v4 = vld [vmem:[%s400_s3 + $0x70] sm:$0xff]  ;;  %v57_v6 = vld [vmem:[#allocation4] sm:$0xff]  ;;  %v56_v7 = vld [vmem:[#allocation2] sm:$0xff] }
   0xe   :  { %82 = vmatpush.msra.mxu0 %v59_v1  ;;  %v102_v8 = vld [vmem:[%s400_s3 + $0x60] sm:$0xff]  ;;  %v101_v9 = vld [vmem:[%s400_s3 + $0x58] sm:$0xff]  ;;  %v100_v10 = vld [vmem:[%s400_s3 + $0x50] sm:$0xff] }
   0xf   :  { %111 = vmatpush.msra.mxu1 %v104_v4  ;;  %v99_v11 = vld [vmem:[%s400_s3 + $0x48] sm:$0xff]  ;;  %v98_v12 = vld [vmem:[%s400_s3 + $0x40] sm:$0xff]  ;;  %v97_v13 = vld [vmem:[%s400_s3 + $0x38] sm:$0xff] }
  0x10   :  { %83 = vmatpush.msra.mxu0 %v58_v3  ;;  %v96_v14 = vld [vmem:[%s400_s3 + $0x30] sm:$0xff]  ;;  %v95_v15 = vld [vmem:[%s400_s3 + $0x28] sm:$0xff]  ;;  %v94_v16 = vld [vmem:[%s400_s3 + $0x20] sm:$0xff] }
  0x11   :  { %112 = vmatpush.msra.mxu1 %v103_v5  ;;  %v93_v17 = vld [vmem:[%s400_s3 + $0x18] sm:$0xff]  ;;  %v92_v18 = vld [vmem:[%s400_s3 + $0x10] sm:$0xff]  ;;  %v91_v19 = vld [vmem:[%s400_s3 + $0x8] sm:$0xff] }
  0x12   :  { %84 = vmatpush.msra.mxu0 %v57_v6  ;;  %v90_v20 = vld [vmem:[%s400_s3] sm:$0xff]  ;;  %v146_v21 = vld [vmem:[%s402_s5 + $0x78] sm:$0xff]  ;;  %v145_v22 = vld [vmem:[%s402_s5 + $0x70] sm:$0xff] }
  0x13   :  { %179 = vmatmul.msk.f32.vlgmr.msra.gmra.mxu0 %vm65_vm0, %v56_v7  ;;  %113 = vmatpush.msra.mxu1 %v102_v8  ;;  %v144_v23 = vld [vmem:[%s402_s5 + $0x68] sm:$0xff]  ;;  %v143_v24 = vld [vmem:[%s402_s5 + $0x60] sm:$0xff]  ;;  %v142_v25 = vld [vmem:[%s402_s5 + $0x58] sm:$0xff] }
  0x14   :  { %151 = vmatpush.msra.mxu2 %v146_v21  ;;  %v141_v26 = vld [vmem:[%s402_s5 + $0x50] sm:$0xff]  ;;  %v140_v27 = vld [vmem:[%s402_s5 + $0x48] sm:$0xff]  ;;  %v139_v28 = vld [vmem:[%s402_s5 + $0x40] sm:$0xff] }
  0x15   :  { %114 = vmatpush.msra.mxu1 %v101_v9  ;;  %v138_v29 = vld [vmem:[%s402_s5 + $0x38] sm:$0xff]  ;;  %v137_v30 = vld [vmem:[%s402_s5 + $0x30] sm:$0xff]  ;;  %v136_v31 = vld [vmem:[%s402_s5 + $0x28] sm:$0xff] }
  0x16   :  { %152 = vmatpush.msra.mxu2 %v145_v22  ;;  %v135_v32 = vld [vmem:[%s402_s5 + $0x20] sm:$0xff]  ;;  %v134_v33 = vld [vmem:[%s402_s5 + $0x18] sm:$0xff]  ;;  %v133_v38 = vld [vmem:[%s402_s5 + $0x10] sm:$0xff] }
  0x17   :  { %115 = vmatpush.msra.mxu1 %v100_v10  ;;  %v184_v34 = vld [vmem:[%s399_s2] ss:$0 sm:$0xff]  ;;  %v132_v39 = vld [vmem:[%s402_s5 + $0x8] sm:$0xff] }
  0x18   :  { %153 = vmatpush.msra.mxu2 %v144_v23  ;;  %v131_v40 = vld [vmem:[%s402_s5] sm:$0xff] }
  0x19   :  { %116 = vmatpush.msra.mxu1 %v99_v11  ;;  %v185_v41 = vld [vmem:[%s401_s4] ss:$0 sm:$0xff] }
  0x1a   :  { %154 = vmatpush.msra.mxu2 %v143_v24  ;;  %v186_v45 = vld [vmem:[%s403_s6] ss:$0 sm:$0xff] }
  0x1b   :  { %117 = vmatpush.msra.mxu1 %v98_v12 }
  0x1c   :  { %155 = vmatpush.msra.mxu2 %v142_v25 }
  0x1d   :  { %118 = vmatpush.msra.mxu1 %v97_v13 }
  0x1e   :  { %156 = vmatpush.msra.mxu2 %v141_v26 }
  0x1f   :  { %119 = vmatpush.msra.mxu1 %v96_v14 }
  0x20   :  { %157 = vmatpush.msra.mxu2 %v140_v27 }
  0x21   :  { %120 = vmatpush.msra.mxu1 %v95_v15 }
  0x22   :  { %158 = vmatpush.msra.mxu2 %v139_v28 }
  0x23   :  { %121 = vmatpush.msra.mxu1 %v94_v16 }
  0x24   :  { %159 = vmatpush.msra.mxu2 %v138_v29 }
  0x25   :  { %122 = vmatpush.msra.mxu1 %v93_v17 }
  0x26   :  { %160 = vmatpush.msra.mxu2 %v137_v30 }
  0x27   :  { %123 = vmatpush.msra.mxu1 %v92_v18 }
  0x28   :  { %161 = vmatpush.msra.mxu2 %v136_v31 }
  0x29   :  { %124 = vmatpush.msra.mxu1 %v91_v19 }
  0x2a   :  { %162 = vmatpush.msra.mxu2 %v135_v32 }
  0x2b   :  { %125 = vmatpush.msra.mxu1 %v90_v20 }
  0x2c   :  { %163 = vmatpush.msra.mxu2 %v134_v33 }
  0x2e   :  { %164 = vmatpush.msra.mxu2 %v133_v38 }
  0x30   :  { %165 = vmatpush.msra.mxu2 %v132_v39 }
  0x32   :  { %166 = vmatpush.msra.mxu2 %v131_v40 }
  0x90   :  { %v86_v35 = vpop.f32.mrf.mxu0 }
  0x91   :  { %v87_v36 = vadd.f32 %v184_v34, %v86_v35 }
  0x93   :  { %v89_v37 = vmax.f32 %v87_v36, 0.0 }
  0x95   :  { %126 = vmatmul.f32.vlgmr.msra.gmra.mxu1 %v89_v37 }
 0x112   :  { %v127_v42 = vpop.f32.mrf.mxu1 }
 0x113   :  { %v128_v43 = vadd.f32 %v185_v41, %v127_v42 }
 0x115   :  { %v130_v44 = vmax.f32 %v128_v43, 0.0 }
 0x117   :  { %167 = vmatmul.f32.vlgmr.msra.gmra.mxu2 %v130_v44 }
 0x19a   :  { %v168_v46 = vpop.f32.mrf.mxu2 }
 0x19b   :  { %v169_v47 = vadd.f32 %v186_v45, %v168_v46 }
 0x19d   :  { %172 = vst.msk [vmem:[%s404_s7] sm:$0xff] %vm171_vm1, %v169_v47 }
 0x19e   :  { %177 = vsyncpa [#allocation3], 1 }
 0x19f   :  { %178 = vsyncpa [#allocation5], 1 }

</bundles_post_ra>
